<compile_context>
chip_gen: v6e
topology: v6e:2x2x1
jax: 0.10.0
libtpu: 0.0.40
codegen_flags: <defaults>
</compile_context>

<pallas_src>
import functools

import jax
import jax.numpy as jnp
from jax.experimental import pallas as pl
from jax.experimental.pallas import tpu as pltpu

LANES = 128


def _sigmoid(x):
    # exp lands on the EUP (its own bundle slot); exact reciprocal for accuracy.
    return pl.reciprocal(1.0 + jnp.exp(-x), approx=False)


def simple_ann_kernel(x_ref, w1_ref, b1_ref, w2_ref, b2_ref, y_ref):
    # x_ref / y_ref: (2, rb, 128) feature-major blocks (batch on sublane+lane axes).
    # w*/b* refs live in SMEM; scalar reads broadcast against the (rb, 128) slabs,
    # so each layer is pure VPU FMAs + EUP transcendentals — no MXU.
    x0 = x_ref[0]  # (rb, 128)
    x1 = x_ref[1]

    h0 = _sigmoid(x0 * w1_ref[0, 0] + x1 * w1_ref[1, 0] + b1_ref[0])
    h1 = _sigmoid(x0 * w1_ref[0, 1] + x1 * w1_ref[1, 1] + b1_ref[1])

    y_ref[0] = _sigmoid(h0 * w2_ref[0, 0] + h1 * w2_ref[1, 0] + b2_ref[0]).astype(y_ref.dtype)
    y_ref[1] = _sigmoid(h0 * w2_ref[0, 1] + h1 * w2_ref[1, 1] + b2_ref[1]).astype(y_ref.dtype)


@functools.partial(jax.jit, static_argnames=("block_rows",))
def simple_ann_forward(x, w1, b1, w2, b2, *, block_rows=256):
    """x: (B, 2) f32; w1: (2,2); b1: (2,); w2: (2,2); b2: (2,) -> (B, 2) f32."""
    B, f_in = x.shape
    f_out = w2.shape[1]

    # Rows of 128 lanes needed to hold the batch.
    r = max(pl.cdiv(B, LANES), 1)
    # Rows per block: either the whole thing (small B) or a multiple of 8
    # (block_rows) — satisfies the (8, 128) tiling constraint in both cases.
    rb = min(block_rows, r)
    r_pad = pl.cdiv(r, rb) * rb
    b_pad = r_pad * LANES

    # Feature-major, (feature, rows, lanes): batch fills sublanes AND lanes.
    xt = (
        jnp.zeros((f_in, b_pad), x.dtype)
        .at[:, :B]
        .set(x.T)
        .reshape(f_in, r_pad, LANES)
    )

    smem = pl.BlockSpec(memory_space=pltpu.MemorySpace.SMEM)

    yt = pl.pallas_call(
        simple_ann_kernel,
        out_shape=jax.ShapeDtypeStruct((f_out, r_pad, LANES), x.dtype),
        grid=(r_pad // rb,),
        in_specs=[
            pl.BlockSpec((f_in, rb, LANES), lambda i: (0, i, 0)),  # x blocks (pipelined)
            smem,  # w1
            smem,  # b1
            smem,  # w2
            smem,  # b2
        ],
        out_specs=pl.BlockSpec((f_out, rb, LANES), lambda i: (0, i, 0)),
        compiler_params=pltpu.CompilerParams(
            dimension_semantics=("parallel",),
        ),
    )(xt, w1, b1, w2, b2)

    return yt.reshape(f_out, b_pad)[:, :B].T


def init_params(key):
    # Deterministic init mimicking nn.Linear's uniform(-1/sqrt(fan_in), 1/sqrt(fan_in)).
    k1, k2, k3, k4 = jax.random.split(key, 4)
    bound = 1.0 / jnp.sqrt(2.0)
    w1 = jax.random.uniform(k1, (2, 2), jnp.float32, -bound, bound)
    b1 = jax.random.uniform(k2, (2,), jnp.float32, -bound, bound)
    w2 = jax.random.uniform(k3, (2, 2), jnp.float32, -bound, bound)
    b2 = jax.random.uniform(k4, (2,), jnp.float32, -bound, bound)
    return w1, b1, w2, b2


if __name__ == "__main__":
    key = jax.random.PRNGKey(0)
    k_params, k_x = jax.random.split(key)
    w1, b1, w2, b2 = init_params(k_params)

    B = 8  # small batch
    x = jax.random.normal(k_x, (B, 2), jnp.float32)

    y = jax.block_until_ready(simple_ann_forward(x, w1, b1, w2, b2))

    # Pure-JAX reference of the same math.
    h_ref = jax.nn.sigmoid(x @ w1 + b1)
    y_ref = jax.nn.sigmoid(h_ref @ w2 + b2)
    assert y.shape == (B, 2)
    assert jnp.allclose(y, y_ref, atol=1e-5), "mismatch vs reference"

    print("KERNEL_OK")
</pallas_src>

<mosaic_0001>
module attributes {stable_mosaic.version = 11 : i64} {
  func.func @simple_ann_kernel(%arg0: i32, %arg1: memref<2x1x128xf32, #tpu.memory_space<vmem>>, %arg2: memref<2x2xf32, #tpu.memory_space<smem>>, %arg3: memref<2xf32, #tpu.memory_space<smem>>, %arg4: memref<2x2xf32, #tpu.memory_space<smem>>, %arg5: memref<2xf32, #tpu.memory_space<smem>>, %arg6: memref<2x1x128xf32, #tpu.memory_space<vmem>>) attributes {dimension_semantics = [#tpu.dimension_semantics<parallel>], iteration_bounds = array<i64: 1>, scalar_prefetch = 0 : i64, scratch_operands = 0 : i64, tpu.core_type = #tpu.core_type<tc>, window_params = [{transform_indices = @transform_0, window_bounds = array<i64: 2, 1, 128>}, {transform_indices = @transform_1, window_bounds = array<i64: 2, 2>}, {transform_indices = @transform_2, window_bounds = array<i64: 2>}, {transform_indices = @transform_3, window_bounds = array<i64: 2, 2>}, {transform_indices = @transform_4, window_bounds = array<i64: 2>}, {transform_indices = @transform_5, window_bounds = array<i64: 2, 1, 128>}]} {
    %c0 = arith.constant 0 : index
    %c0_0 = arith.constant 0 : index
    %c0_1 = arith.constant 0 : index
    %0 = vector.load %arg1[%c0, %c0_0, %c0_1] : memref<2x1x128xf32, #tpu.memory_space<vmem>>, vector<1x1x128xf32>
    %1 = vector.shape_cast %0 : vector<1x1x128xf32> to vector<1x128xf32>
    %c1 = arith.constant 1 : index
    %c0_2 = arith.constant 0 : index
    %c0_3 = arith.constant 0 : index
    %2 = vector.load %arg1[%c1, %c0_2, %c0_3] : memref<2x1x128xf32, #tpu.memory_space<vmem>>, vector<1x1x128xf32>
    %3 = vector.shape_cast %2 : vector<1x1x128xf32> to vector<1x128xf32>
    %c0_4 = arith.constant 0 : index
    %c0_5 = arith.constant 0 : index
    %4 = memref.load %arg2[%c0_4, %c0_5] : memref<2x2xf32, #tpu.memory_space<smem>>
    %5 = vector.broadcast %4 : f32 to vector<1x128xf32>
    %6 = arith.mulf %1, %5 : vector<1x128xf32>
    %c1_6 = arith.constant 1 : index
    %c0_7 = arith.constant 0 : index
    %7 = memref.load %arg2[%c1_6, %c0_7] : memref<2x2xf32, #tpu.memory_space<smem>>
    %8 = vector.broadcast %7 : f32 to vector<1x128xf32>
    %9 = arith.mulf %3, %8 : vector<1x128xf32>
    %10 = arith.addf %6, %9 : vector<1x128xf32>
    %c0_8 = arith.constant 0 : index
    %11 = memref.load %arg3[%c0_8] : memref<2xf32, #tpu.memory_space<smem>>
    %12 = vector.broadcast %11 : f32 to vector<1x128xf32>
    %13 = arith.addf %10, %12 : vector<1x128xf32>
    %cst = arith.constant 0.000000e+00 : f32
    %14 = vector.broadcast %cst : f32 to vector<1x128xf32>
    %15 = arith.subf %14, %13 : vector<1x128xf32>
    %16 = math.exp %15 : vector<1x128xf32>
    %cst_9 = arith.constant 1.000000e+00 : f32
    %17 = vector.broadcast %cst_9 : f32 to vector<1x128xf32>
    %18 = arith.addf %17, %16 : vector<1x128xf32>
    %19 = tpu.reciprocal %18 : vector<1x128xf32> -> vector<1x128xf32>
    %c0_10 = arith.constant 0 : index
    %c1_11 = arith.constant 1 : index
    %20 = memref.load %arg2[%c0_10, %c1_11] : memref<2x2xf32, #tpu.memory_space<smem>>
    %21 = vector.broadcast %20 : f32 to vector<1x128xf32>
    %22 = arith.mulf %1, %21 : vector<1x128xf32>
    %c1_12 = arith.constant 1 : index
    %c1_13 = arith.constant 1 : index
    %23 = memref.load %arg2[%c1_12, %c1_13] : memref<2x2xf32, #tpu.memory_space<smem>>
    %24 = vector.broadcast %23 : f32 to vector<1x128xf32>
    %25 = arith.mulf %3, %24 : vector<1x128xf32>
    %26 = arith.addf %22, %25 : vector<1x128xf32>
    %c1_14 = arith.constant 1 : index
    %27 = memref.load %arg3[%c1_14] : memref<2xf32, #tpu.memory_space<smem>>
    %28 = vector.broadcast %27 : f32 to vector<1x128xf32>
    %29 = arith.addf %26, %28 : vector<1x128xf32>
    %cst_15 = arith.constant 0.000000e+00 : f32
    %30 = vector.broadcast %cst_15 : f32 to vector<1x128xf32>
    %31 = arith.subf %30, %29 : vector<1x128xf32>
    %32 = math.exp %31 : vector<1x128xf32>
    %cst_16 = arith.constant 1.000000e+00 : f32
    %33 = vector.broadcast %cst_16 : f32 to vector<1x128xf32>
    %34 = arith.addf %33, %32 : vector<1x128xf32>
    %35 = tpu.reciprocal %34 : vector<1x128xf32> -> vector<1x128xf32>
    %c0_17 = arith.constant 0 : index
    %c0_18 = arith.constant 0 : index
    %36 = memref.load %arg4[%c0_17, %c0_18] : memref<2x2xf32, #tpu.memory_space<smem>>
    %37 = vector.broadcast %36 : f32 to vector<1x128xf32>
    %38 = arith.mulf %19, %37 : vector<1x128xf32>
    %c1_19 = arith.constant 1 : index
    %c0_20 = arith.constant 0 : index
    %39 = memref.load %arg4[%c1_19, %c0_20] : memref<2x2xf32, #tpu.memory_space<smem>>
    %40 = vector.broadcast %39 : f32 to vector<1x128xf32>
    %41 = arith.mulf %35, %40 : vector<1x128xf32>
    %42 = arith.addf %38, %41 : vector<1x128xf32>
    %c0_21 = arith.constant 0 : index
    %43 = memref.load %arg5[%c0_21] : memref<2xf32, #tpu.memory_space<smem>>
    %44 = vector.broadcast %43 : f32 to vector<1x128xf32>
    %45 = arith.addf %42, %44 : vector<1x128xf32>
    %cst_22 = arith.constant 0.000000e+00 : f32
    %46 = vector.broadcast %cst_22 : f32 to vector<1x128xf32>
    %47 = arith.subf %46, %45 : vector<1x128xf32>
    %48 = math.exp %47 : vector<1x128xf32>
    %cst_23 = arith.constant 1.000000e+00 : f32
    %49 = vector.broadcast %cst_23 : f32 to vector<1x128xf32>
    %50 = arith.addf %49, %48 : vector<1x128xf32>
    %51 = tpu.reciprocal %50 : vector<1x128xf32> -> vector<1x128xf32>
    %c0_24 = arith.constant 0 : index
    %c0_25 = arith.constant 0 : index
    %c0_26 = arith.constant 0 : index
    %52 = vector.load %arg6[%c0_24, %c0_25, %c0_26] : memref<2x1x128xf32, #tpu.memory_space<vmem>>, vector<1x1x128xf32>
    %53 = vector.shape_cast %52 : vector<1x1x128xf32> to vector<1x128xf32>
    %54 = vector.shape_cast %51 : vector<1x128xf32> to vector<1x1x128xf32>
    tpu.vector_store %arg6[%c0_24, %c0_25, %c0_26], %54 {strides = array<i32>} : memref<2x1x128xf32, #tpu.memory_space<vmem>>, vector<1x1x128xf32>,
    %c0_27 = arith.constant 0 : index
    %c1_28 = arith.constant 1 : index
    %55 = memref.load %arg4[%c0_27, %c1_28] : memref<2x2xf32, #tpu.memory_space<smem>>
    %56 = vector.broadcast %55 : f32 to vector<1x128xf32>
    %57 = arith.mulf %19, %56 : vector<1x128xf32>
    %c1_29 = arith.constant 1 : index
    %c1_30 = arith.constant 1 : index
    %58 = memref.load %arg4[%c1_29, %c1_30] : memref<2x2xf32, #tpu.memory_space<smem>>
    %59 = vector.broadcast %58 : f32 to vector<1x128xf32>
    %60 = arith.mulf %35, %59 : vector<1x128xf32>
    %61 = arith.addf %57, %60 : vector<1x128xf32>
    %c1_31 = arith.constant 1 : index
    %62 = memref.load %arg5[%c1_31] : memref<2xf32, #tpu.memory_space<smem>>
    %63 = vector.broadcast %62 : f32 to vector<1x128xf32>
    %64 = arith.addf %61, %63 : vector<1x128xf32>
    %cst_32 = arith.constant 0.000000e+00 : f32
    %65 = vector.broadcast %cst_32 : f32 to vector<1x128xf32>
    %66 = arith.subf %65, %64 : vector<1x128xf32>
    %67 = math.exp %66 : vector<1x128xf32>
    %cst_33 = arith.constant 1.000000e+00 : f32
    %68 = vector.broadcast %cst_33 : f32 to vector<1x128xf32>
    %69 = arith.addf %68, %67 : vector<1x128xf32>
    %70 = tpu.reciprocal %69 : vector<1x128xf32> -> vector<1x128xf32>
    %c1_34 = arith.constant 1 : index
    %c0_35 = arith.constant 0 : index
    %c0_36 = arith.constant 0 : index
    %71 = vector.load %arg6[%c1_34, %c0_35, %c0_36] : memref<2x1x128xf32, #tpu.memory_space<vmem>>, vector<1x1x128xf32>
    %72 = vector.shape_cast %71 : vector<1x1x128xf32> to vector<1x128xf32>
    %73 = vector.shape_cast %70 : vector<1x128xf32> to vector<1x1x128xf32>
    tpu.vector_store %arg6[%c1_34, %c0_35, %c0_36], %73 {strides = array<i32>} : memref<2x1x128xf32, #tpu.memory_space<vmem>>, vector<1x1x128xf32>,
    return
  }
  func.func @transform_0(%arg0: i32) -> (i32, i32, i32) {
    %c0_i32 = arith.constant 0 : i32
    %c0_i32_0 = arith.constant 0 : i32
    %c0_i32_1 = arith.constant 0 : i32
    return %c0_i32, %arg0, %c0_i32_0 : i32, i32, i32
  }
  func.func @transform_1(%arg0: i32) -> (i32, i32) {
    %c0_i32 = arith.constant 0 : i32
    %c0_i32_0 = arith.constant 0 : i32
    %c0_i32_1 = arith.constant 0 : i32
    return %c0_i32, %c0_i32_0 : i32, i32
  }
  func.func @transform_2(%arg0: i32) -> i32 {
    %c0_i32 = arith.constant 0 : i32
    %c0_i32_0 = arith.constant 0 : i32
    return %c0_i32 : i32
  }
  func.func @transform_3(%arg0: i32) -> (i32, i32) {
    %c0_i32 = arith.constant 0 : i32
    %c0_i32_0 = arith.constant 0 : i32
    %c0_i32_1 = arith.constant 0 : i32
    return %c0_i32, %c0_i32_0 : i32, i32
  }
  func.func @transform_4(%arg0: i32) -> i32 {
    %c0_i32 = arith.constant 0 : i32
    %c0_i32_0 = arith.constant 0 : i32
    return %c0_i32 : i32
  }
  func.func @transform_5(%arg0: i32) -> (i32, i32, i32) {
    %c0_i32 = arith.constant 0 : i32
    %c0_i32_0 = arith.constant 0 : i32
    %c0_i32_1 = arith.constant 0 : i32
    return %c0_i32, %arg0, %c0_i32_0 : i32, i32, i32
  }
}

</mosaic_0001>

<bundles_post_ra>
// kernel: simple_ann_forward.1
= control target key start
LH: loop header
LB: loop body
LE: loop exit
PB: predicated region body
PF: predicated region fallthrough
CT: control target
= control target key end

     0   :  { %10 = vsyncpa [#allocation3], 0  ;;  %s283_s0 = inlined_call_operand.vmem [shape: f32[2,1,128], index: 0, kind: input, shape index: {}]   ;;  %s284_s1 = inlined_call_operand.vmem [shape: f32[2,2], index: 1, kind: input, shape index: {}]   ;;  %s285_s2 = inlined_call_operand.vmem [shape: f32[2], index: 2, kind: input, shape index: {}]   ;;  %s286_s3 = inlined_call_operand.vmem [shape: f32[2,2], index: 3, kind: input, shape index: {}]   ;;  %s287_s4 = inlined_call_operand.vmem [shape: f32[2], index: 4, kind: input, shape index: {}]   ;;  %s288_s5 = inlined_call_operand.vmem [shape: f32[2,1,128], index: 5, kind: output, shape index: {}]  }
   0x1   :  { %11 = vsyncpa [#allocation5], 0  ;;  %s31_s20 = sshll.u32 %s285_s2, 4  ;;  %s32_s20 = int_to_ptr.vmem [resolvable:$true] %s31_s20 }
   0x2   :  { %12 = vsyncpa [#allocation8], 0  ;;  %s21_s23 = sshll.u32 %s284_s1, 4  ;;  %s171_s24 = scalar_lea.vmem %s32_s20, 16  ;;  %s22_s23 = int_to_ptr.vmem [resolvable:$true] %s21_s23 }
   0x3   :  { %p172_p0 = scmp.ne.s32.totalorder %s32_s20, %s171_s24  ;;  %p176_p1 = scmp.lt.s32.totalorder %s32_s20, %s32_s20 }
   0x4   :  { %p177_p2 = scmp.lt.s32.totalorder %s171_s24, %s171_s24 }
   0x6   :  { %p178_p3 = por %p177_p2, %p176_p1 }
   0x8   :  { %p179_p4 = pnand %p178_p3, %p172_p0 }
   0xa   :  { %182 = shalt.err (!%p179_p4)
}
   0xb   :  { %s225_s25 = smov [#allocation4]   ;;  %s183_s26 = scalar_lea.vmem %s22_s23, 32 }
   0xc   :  { %34 = dma.vmem_to_smem %s32_s20, 16, %s225_s25, [#allocation5]  }
   0xd   :  { %p184_p5 = scmp.ne.s32.totalorder %s22_s23, %s183_s26  ;;  %p188_p6 = scmp.lt.s32.totalorder %s22_s23, %s22_s23 }
   0xe   :  { %p189_p7 = scmp.lt.s32.totalorder %s183_s26, %s183_s26 }
  0x10   :  { %p190_p8 = por %p189_p7, %p188_p6 }
  0x12   :  { %p191_p9 = pnand %p190_p8, %p184_p5 }
  0x14   :  { %194 = shalt.err (!%p191_p9)
}
  0x15   :  { %s226_s2 = smov [#allocation2]   ;;  %s41_s28 = sshll.u32 %s286_s3, 4  ;;  %s42_s28 = int_to_ptr.vmem [resolvable:$true] %s41_s28 }
  0x16   :  { %24 = dma.vmem_to_smem %s22_s23, 32, %s226_s2, [#allocation3]  }
  0x17   :  { %s51_s6 = sshll.u32 %s287_s4, 4  ;;  %s195_s7 = scalar_lea.vmem %s42_s28, 32  ;;  %s52_s6 = int_to_ptr.vmem [resolvable:$true] %s51_s6 }
  0x18   :  { %p196_p10 = scmp.ne.s32.totalorder %s42_s28, %s195_s7  ;;  %p200_p11 = scmp.lt.s32.totalorder %s42_s28, %s42_s28 }
  0x19   :  { %p201_p12 = scmp.lt.s32.totalorder %s195_s7, %s195_s7 }
  0x1b   :  { %p202_p13 = por %p201_p12, %p200_p11 }
  0x1d   :  { %p203_p0 = pnand %p202_p13, %p196_p10 }
  0x1f   :  { %206 = shalt.err (!%p203_p0)
}
  0x20   :  { %s227_s8 = smov [#allocation6]   ;;  %s207_s9 = scalar_lea.vmem %s52_s6, 16 }
  0x21   :  { %44 = dma.vmem_to_smem %s42_s28, 32, %s227_s8, [#allocation5]  }
  0x22   :  { %p208_p1 = scmp.ne.s32.totalorder %s52_s6, %s207_s9  ;;  %p212_p2 = scmp.lt.s32.totalorder %s52_s6, %s52_s6 }
  0x23   :  { %p213_p3 = scmp.lt.s32.totalorder %s207_s9, %s207_s9 }
  0x25   :  { %p214_p4 = por %p213_p3, %p212_p2 }
  0x27   :  { %p215_p5 = pnand %p214_p4, %p208_p1 }
  0x29   :  { %218 = shalt.err (!%p215_p5)
}
  0x2a   :  { %s228_s3 = smov [#allocation7]  }
  0x2b   :  { %54 = dma.vmem_to_smem %s52_s6, 16, %s228_s3, [#allocation8]  }
  0x2c   :  { %219 = dma.done.wait [#allocation3], 32  }
  0x2d   :  { %220 = vsyncadd [#allocation3], 4294967264 }
  0x2e   :  { %221 = dma.done.wait [#allocation5], 48  }
  0x2f   :  { %222 = vsyncadd [#allocation5], 4294967248 }
  0x30   :  { %223 = dma.done.wait [#allocation8], 16  }
  0x31   :  { %224 = vsyncadd [#allocation8], 4294967280 }
  0x32   :  { %67 = sfence }
  0x33   :  { %s71_s4 = sld [smem:[#allocation2]]  ;;  %v68_v0 = vld [vmem:[%s283_s0] sm:$0x1]  ;;  %v141_v1 = vld [vmem:[%s283_s0 + $0x1] sm:$0x1] }
  0x34   :  { %s142_s10 = sld [smem:[#allocation2 + $0x80]] }
  0x35   :  { %s78_s11 = sld [smem:[#allocation4]] }
  0x36   :  { %s143_s12 = sld [smem:[#allocation2 + $0x1]] }
  0x37   :  { %s144_s15 = sld [smem:[#allocation2 + $0x81]] }
  0x38   :  { %s145_s18 = sld [smem:[#allocation4 + $0x1]] }
  0x39   :  { %v72_v2 = vstv %s71_s4  ;;  %s101_s0 = sld [smem:[#allocation6]] }
  0x3a   :  { %v73_v3 = vmul.f32 %v72_v2, %v68_v0  ;;  %v75_v4 = vstv %s142_s10  ;;  %s147_s19 = sld [smem:[#allocation6 + $0x1]] }
  0x3b   :  { %v76_v5 = vmul.f32 %v141_v1, %v75_v4  ;;  %v79_v6 = vstv %s78_s11  ;;  %s146_s20 = sld [smem:[#allocation6 + $0x80]] }
  0x3c   :  { %v87_v7 = vstv %s143_s12  ;;  %s148_s21 = sld [smem:[#allocation6 + $0x81]] }
  0x3d   :  { %v77_v8 = vadd.f32 %v76_v5, %v73_v3  ;;  %v88_v9 = vmul.f32 %v87_v7, %v68_v0  ;;  %v90_v10 = vstv %s144_s15  ;;  %s108_s22 = sld [smem:[#allocation7]] }
  0x3e   :  { %v91_v11 = vmul.f32 %v141_v1, %v90_v10  ;;  %v94_v13 = vstv %s145_s18  ;;  %s149_s23 = sld [smem:[#allocation7 + $0x1]] }
  0x3f   :  { %v80_v12 = vadd.f32 %v79_v6, %v77_v8  ;;  %v102_v24 = vstv %s101_s0 }
  0x40   :  { %v92_v14 = vadd.f32 %v91_v11, %v88_v9  ;;  %v118_v25 = vstv %s147_s19 }
  0x41   :  { %v81_v15 = vsub.f32 0.0, %v80_v12  ;;  %v105_v27 = vstv %s146_s20 }
  0x42   :  { %v95_v16 = vadd.f32 %v94_v13, %v92_v14  ;;  %v121_v28 = vstv %s148_s21 }
  0x43   :  { %v82_v17 = vmul.f32 1.442695, %v81_v15  ;;  %v109_v34 = vstv %s108_s22 }
  0x44   :  { %v96_v18 = vsub.f32 0.0, %v95_v16  ;;  %v125_v35 = vstv %s149_s23 }
  0x45   :  { %155 = vpow2.f32 %v82_v17 }
  0x46   :  { %v97_v19 = vmul.f32 1.442695, %v96_v18 }
  0x48   :  { %157 = vpow2.f32 %v97_v19 }
  0x52   :  { %v156_v20 = vpop.eup %155 }
  0x53   :  { %v84_v21 = vadd.f32 1.0, %v156_v20 }
  0x55   :  { %v158_v22 = vpop.eup %157  ;;  %159 = vrcp.f32 %v84_v21 }
  0x56   :  { %v99_v23 = vadd.f32 1.0, %v158_v22 }
  0x58   :  { %161 = vrcp.f32 %v99_v23 }
  0x62   :  { %v160_v26 = vpop.eup %159 }
  0x63   :  { %v103_v29 = vmul.f32 %v160_v26, %v102_v24  ;;  %v119_v30 = vmul.f32 %v160_v26, %v118_v25 }
  0x65   :  { %v162_v31 = vpop.eup %161 }
  0x66   :  { %v106_v32 = vmul.f32 %v162_v31, %v105_v27  ;;  %v122_v33 = vmul.f32 %v162_v31, %v121_v28 }
  0x68   :  { %v107_v36 = vadd.f32 %v106_v32, %v103_v29  ;;  %v123_v37 = vadd.f32 %v122_v33, %v119_v30 }
  0x6a   :  { %v110_v38 = vadd.f32 %v109_v34, %v107_v36  ;;  %v126_v39 = vadd.f32 %v125_v35, %v123_v37 }
  0x6c   :  { %v111_v40 = vsub.f32 0.0, %v110_v38  ;;  %v127_v41 = vsub.f32 0.0, %v126_v39 }
  0x6e   :  { %v112_v42 = vmul.f32 1.442695, %v111_v40  ;;  %v128_v43 = vmul.f32 1.442695, %v127_v41 }
  0x70   :  { %163 = vpow2.f32 %v112_v42 }
  0x71   :  { %165 = vpow2.f32 %v128_v43 }
  0x7d   :  { %v164_v44 = vpop.eup %163 }
  0x7e   :  { %v166_v45 = vpop.eup %165  ;;  %v114_v46 = vadd.f32 1.0, %v164_v44 }
  0x7f   :  { %v130_v47 = vadd.f32 1.0, %v166_v45 }
  0x80   :  { %167 = vrcp.f32 %v114_v46 }
  0x81   :  { %169 = vrcp.f32 %v130_v47 }
  0x8d   :  { %v168_v48 = vpop.eup %167 }
  0x8e   :  { %v170_v49 = vpop.eup %169  ;;  %116 = vst [vmem:[%s288_s5] sm:$0x1] %v168_v48 }
  0x8f   :  { %150 = vst [vmem:[%s288_s5 + $0x1] sm:$0x1] %v170_v49 }
  0x90   :  { %138 = vsyncpa [#allocation3], 1 }
  0x91   :  { %139 = vsyncpa [#allocation5], 1 }
  0x92   :  { %140 = vsyncpa [#allocation8], 1 }

</bundles_post_ra>
